<compile_context>
chip_gen: v7x
topology: tpu7x:2x2x1
jax: 0.10.0
libtpu: 0.0.40
codegen_flags: <defaults>
</compile_context>

<pallas_src>
import math

import jax
import jax.numpy as jnp
from jax.experimental import pallas as pl
from jax.experimental.pallas import tpu as pltpu


def _embed_kernel(p_ref, w_ref, a_ref, o_ref):
    # p_ref : (G, L, K)  bf16 patch rows per image; row 0 of every image is 0.
    # w_ref : (K, d)     bf16 embedding weights (grid-invariant).
    # a_ref : (L, d)     f32 additive term [cls+pos[0]; pos[1:]+B_emb] (grid-invariant).
    # o_ref : (G, L, d)  final-layout output tile.
    @pl.loop(0, p_ref.shape[0])
    def _(g):
        # Per-image 2-D matmul keeps the f32 intermediate tiny (L*d), so the
        # VMEM budget goes to bigger DMA tiles instead of matmul scratch.
        emb = jnp.dot(p_ref[g], w_ref[...], preferred_element_type=jnp.float32)
        o_ref[g] = (emb + a_ref[...]).astype(o_ref.dtype)


def _device_info():
    """Light chip detection: (num_tensorcores, vmem_limit_bytes, vmem_budget)."""
    try:
        kind = jax.devices()[0].device_kind.lower()
    except Exception:  # be conservative if detection fails
        kind = ""
    is_v7 = "v7" in kind
    num_cores = 2 if is_v7 else 1
    # v7x: 64 MiB physical VMEM -> smaller scoped request and working set.
    vmem_limit = (40 << 20) if is_v7 else (64 << 20)
    budget = (24 << 20) if is_v7 else (44 << 20)
    return num_cores, vmem_limit, budget


def image_embedding(x, W_emb, B_emb, cls_token, pos_enc, P, *,
                    mxu_dtype=jnp.bfloat16, out_dtype=jnp.float32):
    """Pallas implementation of ImageEmbedding.forward
    (bias=True, classification=True, positional_encoding=True)."""
    if x.ndim == 3:
        x = x[None]
    B, C, H, W = x.shape
    assert H % P == 0 and W % P == 0
    N = (H // P) * (W // P)
    K = P * P
    d = W_emb.shape[1]
    L = N + 1
    BC = B * C
    # torch: cls_token.expand([B, ...]) concat with (B*C, N, d) requires C == 1
    assert C == 1, "classification path requires C == 1 (as in the torch module)"

    # ---- wrapper glue -----------------------------------------------------
    # bf16 cast BEFORE the unfold transpose (the materialized copy moves half
    # the bytes); prepend one zero row per image so the kernel emits the cls
    # row in place (the pad fuses into the transpose copy under jit).
    xh = x.astype(mxu_dtype)
    patches = (xh.reshape(B, C, H // P, P, W // P, P)
                 .transpose(0, 1, 2, 4, 3, 5)
                 .reshape(BC, N, K))
    patches_full = jnp.pad(patches, ((0, 0), (1, 0), (0, 0)))      # (BC, L, K)

    W_m = W_emb.astype(mxu_dtype)                                  # (K, d)
    addend = jnp.concatenate(
        [cls_token.reshape(1, d) + pos_enc[0:1, :],                # cls row
         pos_enc[1:, :] + B_emb],                                  # patch rows
        axis=0).astype(jnp.float32)                                # (L, d)

    # ---- tile selection: G whole images per grid step ---------------------
    num_cores, vmem_limit, budget = _device_info()
    out_bytes = jnp.dtype(out_dtype).itemsize
    in_bytes = jnp.dtype(mxu_dtype).itemsize
    per_image = 2 * (L * K * in_bytes) + 2 * (L * d * out_bytes)   # dbl-buffered in+out
    const_bytes = 2 * (K * d * in_bytes + L * d * 4)               # worst case (dbl-buffered)
    margin = (4 << 20) + 2 * L * d * 4                             # in-kernel temps + slack
    usable = max(budget - const_bytes - margin, per_image)

    divisors = [g for g in range(1, BC + 1) if BC % g == 0]
    fitting = [g for g in divisors if per_image * g <= usable] or [1]
    if num_cores > 1:
        # v7x: keep the number of grid steps a multiple of the core count so
        # both TensorCores get equal work.
        even = [g for g in fitting if (BC // g) % num_cores == 0]
        if even:
            fitting = even
    G = max(fitting)            # largest tile that fits -> fewest, biggest DMA steps
    num_tiles = BC // G

    # ---- pallas call -------------------------------------------------------
    def build(single_buffer_consts):
        const_kw = ({"pipeline_mode": pl.Buffered(1)}
                    if single_buffer_consts else {})
        grid_spec = pltpu.PrefetchScalarGridSpec(
            num_scalar_prefetch=0,
            grid=(num_tiles,),
            in_specs=[
                pl.BlockSpec((G, L, K), lambda t: (t, 0, 0)),
                pl.BlockSpec((K, d), lambda t: (0, 0), **const_kw),
                pl.BlockSpec((L, d), lambda t: (0, 0), **const_kw),
            ],
            out_specs=pl.BlockSpec((G, L, d), lambda t: (t, 0, 0)),
        )
        return pl.pallas_call(
            _embed_kernel,
            out_shape=jax.ShapeDtypeStruct((BC, L, d), out_dtype),
            grid_spec=grid_spec,
            compiler_params=pltpu.CompilerParams(
                dimension_semantics=("parallel",),
                vmem_limit_bytes=vmem_limit,
            ),
        )

    try:
        out = build(True)(patches_full, W_m, addend)
    except Exception:
        # Fallback if this Pallas build rejects pipeline_mode / Buffered(1):
        # the grid-invariant operands are small, double-buffering is fine.
        out = build(False)(patches_full, W_m, addend)
    return out


if __name__ == "__main__":
    # Small shapes consistent with the module: B=4, C=1, 16x16 image, 4x4 patches.
    B, C, H, W, P, d_model = 4, 1, 16, 16, 4, 32
    N = (H // P) * (W // P)   # 16 patches
    L = N + 1                 # +1 class token

    key = jax.random.PRNGKey(0)
    k1, k2, k3, k4, k5 = jax.random.split(key, 5)

    def xavier_uniform(k, shape, fan_in, fan_out):
        bound = math.sqrt(6.0 / (fan_in + fan_out))
        return jax.random.uniform(k, shape, jnp.float32, -bound, bound)

    # Deterministic synthetic parameters (shapes match the nn.Parameter defs).
    W_emb = xavier_uniform(k1, (P * P, d_model), P * P, d_model)       # (P^2, d_model)
    B_emb = xavier_uniform(k2, (N, 1), 1, N)                           # (N, 1)
    cls_token = xavier_uniform(k3, (1, 1, d_model), d_model, d_model)  # (1, 1, d_model)
    pos_enc = xavier_uniform(k4, (L, d_model), d_model, L)             # (L, d_model)

    x = jax.random.normal(k5, (B, C, H, W), jnp.float32)

    out = image_embedding(x, W_emb, B_emb, cls_token, pos_enc, P)
    out = jax.block_until_ready(out)

    # Pure-JAX reference (mirrors the torch forward; MXU inputs see the same
    # bf16 rounding as the kernel so the comparison is apples-to-apples).
    ref_patches = (
        x.reshape(B, C, H // P, P, W // P, P)
        .transpose(0, 1, 2, 4, 3, 5)
        .reshape(B * C, N, P * P)
    )
    pw = ref_patches.astype(jnp.bfloat16).astype(jnp.float32)
    ww = W_emb.astype(jnp.bfloat16).astype(jnp.float32)
    ref = jnp.einsum("bnk,kd->bnd", pw, ww,
                     precision=jax.lax.Precision.HIGHEST) + B_emb
    ref = jnp.concatenate(
        [jnp.broadcast_to(cls_token, (B * C, 1, d_model)), ref], axis=1)
    ref = ref + pos_enc

    assert out.shape == (B * C, L, d_model), out.shape
    assert jnp.allclose(out, ref, atol=1e-4, rtol=1e-4), "mismatch vs reference"
    print("KERNEL_OK")
</pallas_src>

<mosaic_0001>
module attributes {stable_mosaic.version = 11 : i64} {
  func.func @_embed_kernel(%arg0: i32, %arg1: memref<4x17x16xbf16, #tpu.memory_space<vmem>>, %arg2: memref<16x32xbf16, #tpu.memory_space<vmem>>, %arg3: memref<17x32xf32, #tpu.memory_space<vmem>>, %arg4: memref<4x17x32xf32, #tpu.memory_space<vmem>>) attributes {dimension_semantics = [#tpu.dimension_semantics<parallel>], iteration_bounds = array<i64: 1>, scalar_prefetch = 0 : i64, scratch_operands = 0 : i64, tpu.core_type = #tpu.core_type<tc>, window_params = [{transform_indices = @transform_0, window_bounds = array<i64: 4, 17, 16>}, {pipeline_mode = #tpu.pipeline_mode<synchronous>, transform_indices = @transform_1, window_bounds = array<i64: 16, 32>}, {pipeline_mode = #tpu.pipeline_mode<synchronous>, transform_indices = @transform_2, window_bounds = array<i64: 17, 32>}, {transform_indices = @transform_3, window_bounds = array<i64: 4, 17, 32>}]} {
    %c0_i32 = arith.constant 0 : i32
    %c4_i32 = arith.constant 4 : i32
    %0 = arith.addi %c0_i32, %c4_i32 : i32
    %c1_i32 = arith.constant 1 : i32
    scf.for %arg5 = %c0_i32 to %0 step %c1_i32  : i32 {
      %c1_i32_1 = arith.constant 1 : i32
      %1 = arith.muli %arg5, %c1_i32_1 : i32
      %c0_i32_2 = arith.constant 0 : i32
      %2 = arith.addi %c0_i32_2, %1 : i32
      %3 = arith.index_cast %2 : i32 to index
      %c0 = arith.constant 0 : index
      %c0_3 = arith.constant 0 : index
      %4 = vector.load %arg1[%3, %c0, %c0_3] : memref<4x17x16xbf16, #tpu.memory_space<vmem>>, vector<1x17x16xbf16>
      %5 = vector.shape_cast %4 : vector<1x17x16xbf16> to vector<17x16xbf16>
      %c0_4 = arith.constant 0 : index
      %c0_5 = arith.constant 0 : index
      %6 = vector.load %arg2[%c0_4, %c0_5] : memref<16x32xbf16, #tpu.memory_space<vmem>>, vector<16x32xbf16>
      %cst = arith.constant dense<0.000000e+00> : vector<17x32xf32>
      %7 = tpu.matmul %5, %6, %cst {dimension_numbers = #tpu.dot_dimension_numbers<[1], [0], [0], [1], [0, 0, 1, 1], [], []>} : vector<17x16xbf16>, vector<16x32xbf16>, vector<17x32xf32> -> vector<17x32xf32>
      %c0_6 = arith.constant 0 : index
      %c0_7 = arith.constant 0 : index
      %8 = vector.load %arg3[%c0_6, %c0_7] : memref<17x32xf32, #tpu.memory_space<vmem>>, vector<17x32xf32>
      %9 = arith.addf %7, %8 : vector<17x32xf32>
      %10 = arith.index_cast %2 : i32 to index
      %c0_8 = arith.constant 0 : index
      %c0_9 = arith.constant 0 : index
      %11 = vector.load %arg4[%10, %c0_8, %c0_9] : memref<4x17x32xf32, #tpu.memory_space<vmem>>, vector<1x17x32xf32>
      %12 = vector.shape_cast %11 : vector<1x17x32xf32> to vector<17x32xf32>
      %13 = vector.shape_cast %9 : vector<17x32xf32> to vector<1x17x32xf32>
      tpu.vector_store %arg4[%10, %c0_8, %c0_9], %13 {strides = array<i32>} : memref<4x17x32xf32, #tpu.memory_space<vmem>>, vector<1x17x32xf32>,
    }
    %c4_i32_0 = arith.constant 4 : i32
    return
  }
  func.func @transform_0(%arg0: i32) -> (i32, i32, i32) {
    %c0_i32 = arith.constant 0 : i32
    %c0_i32_0 = arith.constant 0 : i32
    %c0_i32_1 = arith.constant 0 : i32
    return %arg0, %c0_i32, %c0_i32_0 : i32, i32, i32
  }
  func.func @transform_1(%arg0: i32) -> (i32, i32) {
    %c0_i32 = arith.constant 0 : i32
    %c0_i32_0 = arith.constant 0 : i32
    %c0_i32_1 = arith.constant 0 : i32
    return %c0_i32, %c0_i32_0 : i32, i32
  }
  func.func @transform_2(%arg0: i32) -> (i32, i32) {
    %c0_i32 = arith.constant 0 : i32
    %c0_i32_0 = arith.constant 0 : i32
    %c0_i32_1 = arith.constant 0 : i32
    return %c0_i32, %c0_i32_0 : i32, i32
  }
  func.func @transform_3(%arg0: i32) -> (i32, i32, i32) {
    %c0_i32 = arith.constant 0 : i32
    %c0_i32_0 = arith.constant 0 : i32
    %c0_i32_1 = arith.constant 0 : i32
    return %arg0, %c0_i32, %c0_i32_0 : i32, i32, i32
  }
}

module attributes {stable_mosaic.version = 11 : i64} {
  func.func @_embed_kernel(%arg0: i32, %arg1: memref<4x17x16xbf16, #tpu.memory_space<vmem>>, %arg2: memref<16x32xbf16, #tpu.memory_space<vmem>>, %arg3: memref<17x32xf32, #tpu.memory_space<vmem>>, %arg4: memref<4x17x32xf32, #tpu.memory_space<vmem>>) attributes {dimension_semantics = [#tpu.dimension_semantics<parallel>], iteration_bounds = array<i64: 1>, scalar_prefetch = 0 : i64, scratch_operands = 0 : i64, tpu.core_type = #tpu.core_type<tc>, window_params = [{transform_indices = @transform_0, window_bounds = array<i64: 4, 17, 16>}, {pipeline_mode = #tpu.pipeline_mode<synchronous>, transform_indices = @transform_1, window_bounds = array<i64: 16, 32>}, {pipeline_mode = #tpu.pipeline_mode<synchronous>, transform_indices = @transform_2, window_bounds = array<i64: 17, 32>}, {transform_indices = @transform_3, window_bounds = array<i64: 4, 17, 32>}]} {
    %c0_i32 = arith.constant 0 : i32
    %c4_i32 = arith.constant 4 : i32
    %0 = arith.addi %c0_i32, %c4_i32 : i32
    %c1_i32 = arith.constant 1 : i32
    scf.for %arg5 = %c0_i32 to %0 step %c1_i32  : i32 {
      %c1_i32_1 = arith.constant 1 : i32
      %1 = arith.muli %arg5, %c1_i32_1 : i32
      %c0_i32_2 = arith.constant 0 : i32
      %2 = arith.addi %c0_i32_2, %1 : i32
      %3 = arith.index_cast %2 : i32 to index
      %c0 = arith.constant 0 : index
      %c0_3 = arith.constant 0 : index
      %4 = vector.load %arg1[%3, %c0, %c0_3] : memref<4x17x16xbf16, #tpu.memory_space<vmem>>, vector<1x17x16xbf16>
      %5 = vector.shape_cast %4 : vector<1x17x16xbf16> to vector<17x16xbf16>
      %c0_4 = arith.constant 0 : index
      %c0_5 = arith.constant 0 : index
      %6 = vector.load %arg2[%c0_4, %c0_5] : memref<16x32xbf16, #tpu.memory_space<vmem>>, vector<16x32xbf16>
      %cst = arith.constant dense<0.000000e+00> : vector<17x32xf32>
      %7 = tpu.matmul %5, %6, %cst {dimension_numbers = #tpu.dot_dimension_numbers<[1], [0], [0], [1], [0, 0, 1, 1], [], []>} : vector<17x16xbf16>, vector<16x32xbf16>, vector<17x32xf32> -> vector<17x32xf32>
      %c0_6 = arith.constant 0 : index
      %c0_7 = arith.constant 0 : index
      %8 = vector.load %arg3[%c0_6, %c0_7] : memref<17x32xf32, #tpu.memory_space<vmem>>, vector<17x32xf32>
      %9 = arith.addf %7, %8 : vector<17x32xf32>
      %10 = arith.index_cast %2 : i32 to index
      %c0_8 = arith.constant 0 : index
      %c0_9 = arith.constant 0 : index
      %11 = vector.load %arg4[%10, %c0_8, %c0_9] : memref<4x17x32xf32, #tpu.memory_space<vmem>>, vector<1x17x32xf32>
      %12 = vector.shape_cast %11 : vector<1x17x32xf32> to vector<17x32xf32>
      %13 = vector.shape_cast %9 : vector<17x32xf32> to vector<1x17x32xf32>
      tpu.vector_store %arg4[%10, %c0_8, %c0_9], %13 {strides = array<i32>} : memref<4x17x32xf32, #tpu.memory_space<vmem>>, vector<1x17x32xf32>,
    }
    %c4_i32_0 = arith.constant 4 : i32
    return
  }
  func.func @transform_0(%arg0: i32) -> (i32, i32, i32) {
    %c0_i32 = arith.constant 0 : i32
    %c0_i32_0 = arith.constant 0 : i32
    %c0_i32_1 = arith.constant 0 : i32
    return %arg0, %c0_i32, %c0_i32_0 : i32, i32, i32
  }
  func.func @transform_1(%arg0: i32) -> (i32, i32) {
    %c0_i32 = arith.constant 0 : i32
    %c0_i32_0 = arith.constant 0 : i32
    %c0_i32_1 = arith.constant 0 : i32
    return %c0_i32, %c0_i32_0 : i32, i32
  }
  func.func @transform_2(%arg0: i32) -> (i32, i32) {
    %c0_i32 = arith.constant 0 : i32
    %c0_i32_0 = arith.constant 0 : i32
    %c0_i32_1 = arith.constant 0 : i32
    return %c0_i32, %c0_i32_0 : i32, i32
  }
  func.func @transform_3(%arg0: i32) -> (i32, i32, i32) {
    %c0_i32 = arith.constant 0 : i32
    %c0_i32_0 = arith.constant 0 : i32
    %c0_i32_1 = arith.constant 0 : i32
    return %arg0, %c0_i32, %c0_i32_0 : i32, i32, i32
  }
}

</mosaic_0001>

<bundles_post_ra>
// kernel: tpu_custom_call.1
= control target key start
LH: loop header
LB: loop body
LE: loop exit
PB: predicated region body
PF: predicated region fallthrough
CT: control target
= control target key end

     0   :  { %8 = vsyncpa [#allocation3], 0  ;;  %s413_s0 = inlined_call_operand.hbm [shape: bf16[4,17,16], index: 0, kind: input, shape index: {}]   ;;  %s414_s1 = inlined_call_operand.hbm [shape: bf16[16,32], index: 1, kind: input, shape index: {}]   ;;  %s415_s2 = inlined_call_operand.hbm [shape: f32[17,32], index: 2, kind: input, shape index: {}]   ;;  %s416_s3 = inlined_call_operand.hbm [shape: f32[4,17,32], index: 3, kind: output, shape index: {}]  }
   0x1   :  { %9 = vsyncpa [#allocation6], 0 }
   0x2   :  { %10 = vsyncpa [#allocation4], 0  ;;  %s314_s12 = smov [#allocation5]   ;;  %s315_s14 = smov [#allocation2]  }
   0x3   :  { %s28_s13 = sshll.u32 %s314_s12, 4  ;;  %s16_s15 = sshll.u32 %s315_s14, 4  ;;  %s29_s13 = int_to_ptr.vmem [resolvable:$true] %s28_s13  ;;  %s342_s15 = int_to_ptr.vmem [resolvable:$true] %s16_s15 }
   0x4   :  { %s212_s18 = scalar_lea.hbm %s414_s1, 128 }
   0x5   :  { %p213_p0 = scmp.ne.s32.totalorder %s414_s1, %s212_s18  ;;  %p216_p1 = scmp.lt.u32.totalorder %s212_s18, %s414_s1 }
   0x7   :  { %p218_p2 = pnand %p216_p1, %p213_p0 }
   0x9   :  { %221 = shalt.err (!%p218_p2)
}
   0xa   :  { %s222_s23 = scalar_lea.vmem %s29_s13, 128  ;;  %p227_p4 = scmp.lt.s32.totalorder %s29_s13, %s29_s13 }
   0xb   :  { %p223_p3 = scmp.ne.s32.totalorder %s29_s13, %s222_s23  ;;  %p228_p5 = scmp.lt.s32.totalorder %s222_s23, %s222_s23 }
   0xd   :  { %p229_p6 = por %p228_p5, %p227_p4 }
   0xf   :  { %p230_p7 = pnand %p229_p6, %p223_p3 }
  0x11   :  { %233 = shalt.err (!%p230_p7)
}
  0x12   :  { %s316_s24 = smov 64   ;;  %s317_s25 = smov 4  }
  0x13   :  { %34 = dma.hbm_to_vmem [thread:$0]  %s414_s1, 128, %s29_s13, [#allocation6], %s316_s24, %s316_s24, %s317_s25  }
  0x14   :  { %s234_s30 = scalar_lea.hbm %s413_s0, 768 }
  0x15   :  { %p235_p8 = scmp.ne.s32.totalorder %s413_s0, %s234_s30  ;;  %p238_p9 = scmp.lt.u32.totalorder %s234_s30, %s413_s0 }
  0x17   :  { %p240_p10 = pnand %p238_p9, %p235_p8 }
  0x19   :  { %243 = shalt.err (!%p240_p10)
}
  0x1a   :  { %s244_s8 = scalar_lea.vmem %s342_s15, 768  ;;  %p249_p12 = scmp.lt.s32.totalorder %s342_s15, %s342_s15 }
  0x1b   :  { %p245_p11 = scmp.ne.s32.totalorder %s342_s15, %s244_s8  ;;  %p250_p13 = scmp.lt.s32.totalorder %s244_s8, %s244_s8 }
  0x1d   :  { %p251_p0 = por %p250_p13, %p249_p12 }
  0x1f   :  { %p252_p1 = pnand %p251_p0, %p245_p11 }
  0x21   :  { %255 = shalt.err (!%p252_p1)
}
  0x22   :  { %22 = dma.hbm_to_vmem [thread:$0]  %s413_s0, 768, %s342_s15, [#allocation3], %s316_s24, %s316_s24, %s317_s25  }
  0x23   :  { %s318_s10 = smov [#allocation7]   ;;  %s256_s14 = scalar_lea.hbm %s415_s2, 384 }
  0x24   :  { %s40_s11 = sshll.u32 %s318_s10, 4  ;;  %p257_p2 = scmp.ne.s32.totalorder %s415_s2, %s256_s14  ;;  %s41_s11 = int_to_ptr.vmem [resolvable:$true] %s40_s11 }
  0x25   :  { %p260_p3 = scmp.lt.u32.totalorder %s256_s14, %s415_s2 }
  0x27   :  { %p262_p4 = pnand %p260_p3, %p257_p2 }
  0x29   :  { %265 = shalt.err (!%p262_p4)
}
  0x2a   :  { %s266_s20 = scalar_lea.vmem %s41_s11, 384  ;;  %p271_p6 = scmp.lt.s32.totalorder %s41_s11, %s41_s11 }
  0x2b   :  { %p267_p5 = scmp.ne.s32.totalorder %s41_s11, %s266_s20  ;;  %p272_p7 = scmp.lt.s32.totalorder %s266_s20, %s266_s20 }
  0x2d   :  { %p273_p8 = por %p272_p7, %p271_p6 }
  0x2f   :  { %p274_p9 = pnand %p273_p8, %p267_p5 }
  0x31   :  { %277 = shalt.err (!%p274_p9)
}
  0x32   :  { %s319_s0 = smov 128   ;;  %s320_s15 = smov 8  }
  0x33   :  { %46 = dma.hbm_to_vmem [thread:$0]  %s415_s2, 384, %s41_s11, [#allocation6], %s319_s0, %s319_s0, %s320_s15  }
  0x34   :  { %304 = dma.done.wait [#allocation3], 768  }
  0x35   :  { %305 = vsyncadd [#allocation3], 4294966528 }
  0x36   :  { %306 = dma.done.wait [#allocation6], 512  }
  0x37   :  { %307 = vsyncadd [#allocation6], 4294966784  ;;  %s388_s23 = smov 0  }
  0x38 LB: > { %v209_v0 = vld [vmem:[#allocation5] sm:$0xff]   ;;  %s183_s24 = smul.u32 12, %s312_s23  ;;  %vm88_vm0 = vcmask 130048   ;;  %v73_v3 = vld [vmem:[#allocation7 + $0x10] sm:$0x1]  ;;  %v71_v4 = vld [vmem:[#allocation7] sm:$0xff]  ;;  %s312_s23 = sphi %s388_s23, %s62_s23  }
  0x39   : > { %187 = vmatprep.subr.bf16.mxu0 %v209_v0  ;;  %s143_s2 = smul.u32 24, %s312_s23  ;;  %vm148_vm1 = vcmask 253952   ;;  %vm145_vm2 = vcmask 261120   ;;  %v72_v8 = vld [vmem:[#allocation7 + $0x8] sm:$0xff]  ;;  %s62_s23 = sadd.s32 1, %s312_s23  }
  0x3a   : > { %188 = vmatpush3.bf16.msra.mxu0 %v209_v0  ;;  %s65_s25 = scalar_lea.vmem [#allocation2], %s183_s24  ;;  %p59_p10 = scmp.ge.s32.totalorder %s62_s23, 4  }
  0x3b   : > { %v210_v1 = vld [vmem:[%s65_s25] sm:$0xff]   ;;  %v211_v2 = vld [vmem:[%s65_s25 + $0x8] ss:$0 sps:$4 sm:$0x11]   ;;  %s144_s26 = scalar_lea.vmem [#allocation8], %s143_s2  ;;  %s321_s27 = smov (%p59_p10), [#allocation8]  }
  0x3c   : > { %189 = vmatprep.mubr.msk.bf16.mxu0 %vm88_vm0, %v210_v1  ;;  %s155_s28 = sshll.u32 (%p59_p10), %s321_s27, 4  ;;  %s156_s28 = int_to_ptr.vmem [resolvable:$true] %s155_s28 }
  0x3d   : > { %190 = vmatmul.mubr.msk.bf16.vlgmr.msra.gmra.mrb[0].mxu0 %vm88_vm0, %v211_v2  ;;  %s278_s29 = scalar_lea.vmem (%p59_p10), %s156_s28, 1536  ;;  %p283_p12 = scmp.lt.s32.totalorder (%p59_p10), %s156_s28, %s156_s28 }
  0x3e   :  { %p279_p11 = scmp.ne.s32.totalorder (%p59_p10), %s156_s28, %s278_s29  ;;  %p284_p13 = scmp.lt.s32.totalorder (%p59_p10), %s278_s29, %s278_s29 }
  0x40   :  { %p285_p0 = por (%p59_p10), %p284_p13, %p283_p12 }
  0x42   :  { %p286_p1 = pnand (%p59_p10), %p285_p0, %p279_p11 }
 0x110   : > { %v191_v5 = vpop.f32.mrb[0].mxu0  ;;  %61 = sbr.rel (!%p59_p10) target bundleno = 56 (0x38), region = 53 }
 0x111   : > { %v138_v6 = vadd.f32 %v191_v5, %v73_v3  ;;  %v129_v7 = vpop.f32.mrb[1].mxu0 }
 0x112   : > { %v130_v9 = vadd.f32 %v129_v7, %v71_v4  ;;  %v192_v10 = vpop.f32.mrb[2].mxu0 }
 0x113   : > { %149 = vst.msk [vmem:[%s144_s26 + $0x10] sm:$0x1] %vm148_vm1, %v138_v6  ;;  %v132_v11 = vpop.f32.mrb[3].mxu0 }
 0x114   : > { %146 = vst.msk [vmem:[%s144_s26] sm:$0xff] %vm145_vm2, %v130_v9  ;;  %v133_v12 = vadd.f32 %v132_v11, %v72_v8 }
 0x116   : > { %147 = vst.msk [vmem:[%s144_s26 + $0x8] sm:$0xff] %vm145_vm2, %v133_v12 }
 0x117   :  { %289 = shalt.err (!%p286_p1)
}
 0x118   :  { %s290_s5 = scalar_lea.hbm %s416_s3, 1536 }
 0x119   :  { %p291_p2 = scmp.ne.s32.totalorder %s416_s3, %s290_s5  ;;  %p294_p3 = scmp.lt.u32.totalorder %s290_s5, %s416_s3 }
 0x11b   :  { %p296_p4 = pnand %p294_p3, %p291_p2 }
 0x11d   :  { %299 = shalt.err (!%p296_p4)
}
 0x11e   :  { %161 = dma.vmem_to_hbm [thread:$0]  %s156_s28, 1536, %s416_s3, [#allocation4], %s319_s0, %s319_s0, %s320_s15  }
 0x11f   :  { %308 = dma.done.wait [#allocation4], 1536  }
 0x120   :  { %309 = vsyncadd [#allocation4], 4294965760 }
 0x121   :  { %165 = vsyncpa [#allocation3], 1 }
 0x122   :  { %166 = vsyncpa [#allocation6], 1 }
 0x123   :  { %167 = vsyncpa [#allocation4], 1 }

// kernel: tpu_custom_call.1
= control target key start
LH: loop header
LB: loop body
LE: loop exit
PB: predicated region body
PF: predicated region fallthrough
CT: control target
= control target key end

     0   :  { %8 = vsyncpa [#allocation3], 0  ;;  %s413_s0 = inlined_call_operand.hbm [shape: bf16[4,17,16], index: 0, kind: input, shape index: {}]   ;;  %s414_s1 = inlined_call_operand.hbm [shape: bf16[16,32], index: 1, kind: input, shape index: {}]   ;;  %s415_s2 = inlined_call_operand.hbm [shape: f32[17,32], index: 2, kind: input, shape index: {}]   ;;  %s416_s3 = inlined_call_operand.hbm [shape: f32[4,17,32], index: 3, kind: output, shape index: {}]  }
   0x1   :  { %9 = vsyncpa [#allocation6], 0 }
   0x2   :  { %10 = vsyncpa [#allocation4], 0  ;;  %s314_s12 = smov [#allocation5]   ;;  %s315_s14 = smov [#allocation2]  }
   0x3   :  { %s28_s13 = sshll.u32 %s314_s12, 4  ;;  %s16_s15 = sshll.u32 %s315_s14, 4  ;;  %s29_s13 = int_to_ptr.vmem [resolvable:$true] %s28_s13  ;;  %s342_s15 = int_to_ptr.vmem [resolvable:$true] %s16_s15 }
   0x4   :  { %s212_s18 = scalar_lea.hbm %s414_s1, 128 }
   0x5   :  { %p213_p0 = scmp.ne.s32.totalorder %s414_s1, %s212_s18  ;;  %p216_p1 = scmp.lt.u32.totalorder %s212_s18, %s414_s1 }
   0x7   :  { %p218_p2 = pnand %p216_p1, %p213_p0 }
   0x9   :  { %221 = shalt.err (!%p218_p2)
}
   0xa   :  { %s222_s23 = scalar_lea.vmem %s29_s13, 128  ;;  %p227_p4 = scmp.lt.s32.totalorder %s29_s13, %s29_s13 }
   0xb   :  { %p223_p3 = scmp.ne.s32.totalorder %s29_s13, %s222_s23  ;;  %p228_p5 = scmp.lt.s32.totalorder %s222_s23, %s222_s23 }
   0xd   :  { %p229_p6 = por %p228_p5, %p227_p4 }
   0xf   :  { %p230_p7 = pnand %p229_p6, %p223_p3 }
  0x11   :  { %233 = shalt.err (!%p230_p7)
}
  0x12   :  { %s316_s24 = smov 64   ;;  %s317_s25 = smov 4  }
  0x13   :  { %34 = dma.hbm_to_vmem [thread:$0]  %s414_s1, 128, %s29_s13, [#allocation6], %s316_s24, %s316_s24, %s317_s25  }
  0x14   :  { %s234_s30 = scalar_lea.hbm %s413_s0, 768 }
  0x15   :  { %p235_p8 = scmp.ne.s32.totalorder %s413_s0, %s234_s30  ;;  %p238_p9 = scmp.lt.u32.totalorder %s234_s30, %s413_s0 }
  0x17   :  { %p240_p10 = pnand %p238_p9, %p235_p8 }
  0x19   :  { %243 = shalt.err (!%p240_p10)
}
  0x1a   :  { %s244_s8 = scalar_lea.vmem %s342_s15, 768  ;;  %p249_p12 = scmp.lt.s32.totalorder %s342_s15, %s342_s15 }
  0x1b   :  { %p245_p11 = scmp.ne.s32.totalorder %s342_s15, %s244_s8  ;;  %p250_p13 = scmp.lt.s32.totalorder %s244_s8, %s244_s8 }
  0x1d   :  { %p251_p0 = por %p250_p13, %p249_p12 }
  0x1f   :  { %p252_p1 = pnand %p251_p0, %p245_p11 }
  0x21   :  { %255 = shalt.err (!%p252_p1)
}
  0x22   :  { %22 = dma.hbm_to_vmem [thread:$0]  %s413_s0, 768, %s342_s15, [#allocation3], %s316_s24, %s316_s24, %s317_s25  }
  0x23   :  { %s318_s10 = smov [#allocation7]   ;;  %s256_s14 = scalar_lea.hbm %s415_s2, 384 }
  0x24   :  { %s40_s11 = sshll.u32 %s318_s10, 4  ;;  %p257_p2 = scmp.ne.s32.totalorder %s415_s2, %s256_s14  ;;  %s41_s11 = int_to_ptr.vmem [resolvable:$true] %s40_s11 }
  0x25   :  { %p260_p3 = scmp.lt.u32.totalorder %s256_s14, %s415_s2 }
  0x27   :  { %p262_p4 = pnand %p260_p3, %p257_p2 }
  0x29   :  { %265 = shalt.err (!%p262_p4)
}
  0x2a   :  { %s266_s20 = scalar_lea.vmem %s41_s11, 384  ;;  %p271_p6 = scmp.lt.s32.totalorder %s41_s11, %s41_s11 }
  0x2b   :  { %p267_p5 = scmp.ne.s32.totalorder %s41_s11, %s266_s20  ;;  %p272_p7 = scmp.lt.s32.totalorder %s266_s20, %s266_s20 }
  0x2d   :  { %p273_p8 = por %p272_p7, %p271_p6 }
  0x2f   :  { %p274_p9 = pnand %p273_p8, %p267_p5 }
  0x31   :  { %277 = shalt.err (!%p274_p9)
}
  0x32   :  { %s319_s0 = smov 128   ;;  %s320_s15 = smov 8  }
  0x33   :  { %46 = dma.hbm_to_vmem [thread:$0]  %s415_s2, 384, %s41_s11, [#allocation6], %s319_s0, %s319_s0, %s320_s15  }
  0x34   :  { %304 = dma.done.wait [#allocation3], 768  }
  0x35   :  { %305 = vsyncadd [#allocation3], 4294966528 }
  0x36   :  { %306 = dma.done.wait [#allocation6], 512  }
  0x37   :  { %307 = vsyncadd [#allocation6], 4294966784  ;;  %s388_s23 = smov 0  }
  0x38 LB: > { %v209_v0 = vld [vmem:[#allocation5] sm:$0xff]   ;;  %s183_s24 = smul.u32 12, %s312_s23  ;;  %vm88_vm0 = vcmask 130048   ;;  %v73_v3 = vld [vmem:[#allocation7 + $0x10] sm:$0x1]  ;;  %v71_v4 = vld [vmem:[#allocation7] sm:$0xff]  ;;  %s312_s23 = sphi %s388_s23, %s62_s23  }
  0x39   : > { %187 = vmatprep.subr.bf16.mxu0 %v209_v0  ;;  %s143_s2 = smul.u32 24, %s312_s23  ;;  %vm148_vm1 = vcmask 253952   ;;  %vm145_vm2 = vcmask 261120   ;;  %v72_v8 = vld [vmem:[#allocation7 + $0x8] sm:$0xff]  ;;  %s62_s23 = sadd.s32 1, %s312_s23  }
  0x3a   : > { %188 = vmatpush3.bf16.msra.mxu0 %v209_v0  ;;  %s65_s25 = scalar_lea.vmem [#allocation2], %s183_s24  ;;  %p59_p10 = scmp.ge.s32.totalorder %s62_s23, 4  }
  0x3b   : > { %v210_v1 = vld [vmem:[%s65_s25] sm:$0xff]   ;;  %v211_v2 = vld [vmem:[%s65_s25 + $0x8] ss:$0 sps:$4 sm:$0x11]   ;;  %s144_s26 = scalar_lea.vmem [#allocation8], %s143_s2  ;;  %s321_s27 = smov (%p59_p10), [#allocation8]  }
  0x3c   : > { %189 = vmatprep.mubr.msk.bf16.mxu0 %vm88_vm0, %v210_v1  ;;  %s155_s28 = sshll.u32 (%p59_p10), %s321_s27, 4  ;;  %s156_s28 = int_to_ptr.vmem [resolvable:$true] %s155_s28 }
  0x3d   : > { %190 = vmatmul.mubr.msk.bf16.vlgmr.msra.gmra.mrb[0].mxu0 %vm88_vm0, %v211_v2  ;;  %s278_s29 = scalar_lea.vmem (%p59_p10), %s156_s28, 1536  ;;  %p283_p12 = scmp.lt.s32.totalorder (%p59_p10), %s156_s28, %s156_s28 }
  0x3e   :  { %p279_p11 = scmp.ne.s32.totalorder (%p59_p10), %s156_s28, %s278_s29  ;;  %p284_p13 = scmp.lt.s32.totalorder (%p59_p10), %s278_s29, %s278_s29 }
  0x40   :  { %p285_p0 = por (%p59_p10), %p284_p13, %p283_p12 }
  0x42   :  { %p286_p1 = pnand (%p59_p10), %p285_p0, %p279_p11 }
 0x110   : > { %v191_v5 = vpop.f32.mrb[0].mxu0  ;;  %61 = sbr.rel (!%p59_p10) target bundleno = 56 (0x38), region = 53 }
 0x111   : > { %v138_v6 = vadd.f32 %v191_v5, %v73_v3  ;;  %v129_v7 = vpop.f32.mrb[1].mxu0 }
 0x112   : > { %v130_v9 = vadd.f32 %v129_v7, %v71_v4  ;;  %v192_v10 = vpop.f32.mrb[2].mxu0 }
 0x113   : > { %149 = vst.msk [vmem:[%s144_s26 + $0x10] sm:$0x1] %vm148_vm1, %v138_v6  ;;  %v132_v11 = vpop.f32.mrb[3].mxu0 }
 0x114   : > { %146 = vst.msk [vmem:[%s144_s26] sm:$0xff] %vm145_vm2, %v130_v9  ;;  %v133_v12 = vadd.f32 %v132_v11, %v72_v8 }
 0x116   : > { %147 = vst.msk [vmem:[%s144_s26 + $0x8] sm:$0xff] %vm145_vm2, %v133_v12 }
 0x117   :  { %289 = shalt.err (!%p286_p1)
}
 0x118   :  { %s290_s5 = scalar_lea.hbm %s416_s3, 1536 }
 0x119   :  { %p291_p2 = scmp.ne.s32.totalorder %s416_s3, %s290_s5  ;;  %p294_p3 = scmp.lt.u32.totalorder %s290_s5, %s416_s3 }
 0x11b   :  { %p296_p4 = pnand %p294_p3, %p291_p2 }
 0x11d   :  { %299 = shalt.err (!%p296_p4)
}
 0x11e   :  { %161 = dma.vmem_to_hbm [thread:$0]  %s156_s28, 1536, %s416_s3, [#allocation4], %s319_s0, %s319_s0, %s320_s15  }
 0x11f   :  { %308 = dma.done.wait [#allocation4], 1536  }
 0x120   :  { %309 = vsyncadd [#allocation4], 4294965760 }
 0x121   :  { %165 = vsyncpa [#allocation3], 1 }
 0x122   :  { %166 = vsyncpa [#allocation6], 1 }
 0x123   :  { %167 = vsyncpa [#allocation4], 1 }

</bundles_post_ra>
